<compile_context>
chip_gen: v6e
topology: v6e:2x2x1
jax: 0.10.0
libtpu: 0.0.40
codegen_flags: <defaults>
</compile_context>

<pallas_src>
import functools

import jax
import jax.numpy as jnp
from jax.experimental import pallas as pl
from jax.experimental.pallas import tpu as pltpu

LANE = 128    # lane width (batch tile must be a multiple of this)
SUB = 8       # sublane multiple
IN_PAD = 8    # 4 real input features padded to one sublane group

# true layer sizes of FCNN4
SIZES = [4, 128, 64, 32, 16, 1]


def _round_up(n, m):
    return ((n + m - 1) // m) * m


def fcnn4_kernel(x_ref,
                 w12_ref, b12_ref,
                 w3_ref, b3_ref,
                 w4_ref, b4_ref,
                 w5_ref, b5_ref,
                 o_ref):
    """Fused folded-MLP + sigmoid for one batch tile, feature-major layout.

    x_ref:   (IN_PAD, TB) bf16    -- batch on the lane axis
    w*_ref:  (out, in)   bf16     -- transposed, VMEM-resident
    b*_ref:  (out, 1)    f32      -- broadcast across lanes
    w5_ref:  (16, 1)     f32      -- final layer as a column (VPU reduce)
    b5_ref:  (1, 1)      f32
    o_ref:   (1, TB)     f32      -- lane-dense sigmoid row
    """
    # folded 'input'+'linear1': Linear(4->64), then ReLU ('relu2')
    h = jnp.dot(w12_ref[...], x_ref[...],
                preferred_element_type=jnp.float32) + b12_ref[...]
    h = jnp.maximum(h, 0.0)                                   # (64, TB)

    # 'linear2': Linear(64->32) + ReLU
    h = jnp.dot(w3_ref[...], h.astype(jnp.bfloat16),
                preferred_element_type=jnp.float32) + b3_ref[...]
    h = jnp.maximum(h, 0.0)                                   # (32, TB)

    # 'linear3': Linear(32->16) + ReLU
    h = jnp.dot(w4_ref[...], h.astype(jnp.bfloat16),
                preferred_element_type=jnp.float32) + b4_ref[...]
    h = jnp.maximum(h, 0.0)                                   # (16, TB)

    # 'output': Linear(16->1) as VPU multiply + sublane reduce (no MXU op),
    # then exact sigmoid (EUP exp + f32 reciprocal; output stays in [0,1]).
    logit = jnp.sum(h * w5_ref[...], axis=0, keepdims=True) + b5_ref[...]
    o_ref[...] = pl.reciprocal(1.0 + jnp.exp(-logit), approx=False)


def prepare_params(params):
    """Fold, pad, transpose and cast parameters ONCE (outside the call path).

    params: list of (W(in,out), b(out,)) in true sizes, any float dtype.
    Returns (w12,b12, w3,b3, w4,b4, w5,b5):
      * W1,W2 folded exactly in f32 (no activation between them).
      * Matmul weights stored transposed (out, in_pad), contraction dim padded
        to a multiple of 8, cast to bf16.
      * Biases as f32 (out, 1) columns.
      * Final layer kept as an f32 (16, 1) column + (1, 1) bias for the
        in-kernel VPU reduction.
    """
    (w1, b1), (w2, b2), (w3, b3), (w4, b4), (w5, b5) = [
        (w.astype(jnp.float32), b.astype(jnp.float32)) for (w, b) in params]

    # exact fold of 'input' (4->128) and 'linear1' (128->64) in f32
    w12 = w1 @ w2                 # (4, 64)
    b12 = b1 @ w2 + b2            # (64,)

    def w_t_bf16(w):
        k_in, _ = w.shape
        k_pad = _round_up(k_in, SUB)
        return jnp.pad(w, ((0, k_pad - k_in), (0, 0))).T.astype(jnp.bfloat16)

    def b_col(b):
        return b.reshape(-1, 1)   # f32 column, lane-broadcast in-kernel

    return (w_t_bf16(w12), b_col(b12),
            w_t_bf16(w3), b_col(b3),
            w_t_bf16(w4), b_col(b4),
            w5,                    # (16, 1) f32 column
            b5.reshape(1, 1))      # (1, 1) f32


@functools.partial(jax.jit, static_argnames=("tb",))
def fcnn4_forward(x, prepped, tb=1024):
    """x: (B, 4) float.  prepped: output of prepare_params().

    Returns (B, 1) float32, matching torch's FCNN4.forward semantics.
    """
    B, F = x.shape
    # Batch tile lives on the lane axis -> keep it a multiple of 128.
    # TODO(synk): on v7x, pick TB so Bp//TB is a multiple of 2 (2 TensorCores).
    TB = min(_round_up(tb, LANE), _round_up(B, LANE))
    Bp = _round_up(B, TB)

    # pad (B,4)->(Bp,IN_PAD), transpose to feature-major, cast to bf16 once.
    x_p = jnp.pad(x, ((0, Bp - B), (0, IN_PAD - F))).T.astype(jnp.bfloat16)

    grid = (Bp // TB,)

    def resident(a):
        # full-array block, same block every grid step -> DMA'd once, stays in VMEM
        return pl.BlockSpec(a.shape, lambda i: (0, 0))

    out_row = pl.pallas_call(
        fcnn4_kernel,
        out_shape=jax.ShapeDtypeStruct((1, Bp), jnp.float32),
        grid=grid,
        in_specs=[pl.BlockSpec((IN_PAD, TB), lambda i: (0, i))]
                 + [resident(a) for a in prepped],
        out_specs=pl.BlockSpec((1, TB), lambda i: (0, i)),
        compiler_params=pltpu.CompilerParams(
            dimension_semantics=("parallel",)),
    )(x_p, *prepped)

    return out_row[:, :B].T   # (B, 1)


def init_params(key):
    """Deterministic init mimicking torch.nn.Linear default U(-1/sqrt(in), 1/sqrt(in)).

    Weights stored as (in, out) so the reference does x @ W directly.
    """
    params = []
    for i in range(len(SIZES) - 1):
        fan_in, fan_out = SIZES[i], SIZES[i + 1]
        key, kw, kb = jax.random.split(key, 3)
        bound = 1.0 / jnp.sqrt(fan_in)
        w = jax.random.uniform(kw, (fan_in, fan_out), jnp.float32, -bound, bound)
        b = jax.random.uniform(kb, (fan_out,), jnp.float32, -bound, bound)
        params.append((w, b))
    return params


def reference_forward(x, params):
    h = x.astype(jnp.float32)
    for i, (w, b) in enumerate(params):
        h = h @ w + b
        if i in (1, 2, 3):  # ReLU after linear1, linear2, linear3
            h = jnp.maximum(h, 0.0)
    return jax.nn.sigmoid(h)


if __name__ == "__main__":
    key = jax.random.PRNGKey(0)
    key, kx = jax.random.split(key)

    params = init_params(key)
    prepped = prepare_params(params)   # fold + pad + bf16 cast once

    # FCNN4 takes a 4-feature input (bird coords + pipe coords); batch=8.
    x = jax.random.normal(kx, (8, 4), jnp.float32)
    out = jax.block_until_ready(fcnn4_forward(x, prepped))
    ref = reference_forward(x, params)
    assert out.shape == (8, 1), out.shape
    # bf16 matmul operands + folded first layer -> loosened tolerance vs f32 ref.
    assert jnp.allclose(out, ref, atol=2e-2, rtol=0.0), (out, ref)

    # Larger batch with a small tile: exercises the multi-tile pipelined grid.
    key, kx2 = jax.random.split(key)
    x2 = jax.random.normal(kx2, (600, 4), jnp.float32)
    out2 = jax.block_until_ready(fcnn4_forward(x2, prepped, tb=256))
    ref2 = reference_forward(x2, params)
    assert out2.shape == (600, 1), out2.shape
    assert jnp.allclose(out2, ref2, atol=2e-2, rtol=0.0)

    print("KERNEL_OK")
</pallas_src>

<mosaic_0001>
module attributes {stable_mosaic.version = 11 : i64} {
  func.func @fcnn4_kernel(%arg0: i32, %arg1: memref<8x128xbf16, #tpu.memory_space<vmem>>, %arg2: memref<64x8xbf16, #tpu.memory_space<vmem>>, %arg3: memref<64x1xf32, #tpu.memory_space<vmem>>, %arg4: memref<32x64xbf16, #tpu.memory_space<vmem>>, %arg5: memref<32x1xf32, #tpu.memory_space<vmem>>, %arg6: memref<16x32xbf16, #tpu.memory_space<vmem>>, %arg7: memref<16x1xf32, #tpu.memory_space<vmem>>, %arg8: memref<16x1xf32, #tpu.memory_space<vmem>>, %arg9: memref<1x1xf32, #tpu.memory_space<vmem>>, %arg10: memref<1x128xf32, #tpu.memory_space<vmem>>) attributes {dimension_semantics = [#tpu.dimension_semantics<parallel>], iteration_bounds = array<i64: 1>, scalar_prefetch = 0 : i64, scratch_operands = 0 : i64, tpu.core_type = #tpu.core_type<tc>, window_params = [{transform_indices = @transform_0, window_bounds = array<i64: 8, 128>}, {pipeline_mode = #tpu.pipeline_mode<synchronous>, transform_indices = @transform_1, window_bounds = array<i64: 64, 8>}, {pipeline_mode = #tpu.pipeline_mode<synchronous>, transform_indices = @transform_2, window_bounds = array<i64: 64, 1>}, {pipeline_mode = #tpu.pipeline_mode<synchronous>, transform_indices = @transform_3, window_bounds = array<i64: 32, 64>}, {pipeline_mode = #tpu.pipeline_mode<synchronous>, transform_indices = @transform_4, window_bounds = array<i64: 32, 1>}, {pipeline_mode = #tpu.pipeline_mode<synchronous>, transform_indices = @transform_5, window_bounds = array<i64: 16, 32>}, {pipeline_mode = #tpu.pipeline_mode<synchronous>, transform_indices = @transform_6, window_bounds = array<i64: 16, 1>}, {pipeline_mode = #tpu.pipeline_mode<synchronous>, transform_indices = @transform_7, window_bounds = array<i64: 16, 1>}, {pipeline_mode = #tpu.pipeline_mode<synchronous>, transform_indices = @transform_8, window_bounds = array<i64: 1, 1>}, {transform_indices = @transform_9, window_bounds = array<i64: 1, 128>}]} {
    %c0 = arith.constant 0 : index
    %c0_0 = arith.constant 0 : index
    %0 = vector.load %arg2[%c0, %c0_0] : memref<64x8xbf16, #tpu.memory_space<vmem>>, vector<64x8xbf16>
    %c0_1 = arith.constant 0 : index
    %c0_2 = arith.constant 0 : index
    %1 = vector.load %arg1[%c0_1, %c0_2] : memref<8x128xbf16, #tpu.memory_space<vmem>>, vector<8x128xbf16>
    %cst = arith.constant dense<0.000000e+00> : vector<64x128xf32>
    %2 = tpu.matmul %0, %1, %cst {dimension_numbers = #tpu.dot_dimension_numbers<[1], [0], [0], [1], [0, 0, 1, 1], [], []>} : vector<64x8xbf16>, vector<8x128xbf16>, vector<64x128xf32> -> vector<64x128xf32>
    %c0_3 = arith.constant 0 : index
    %c0_4 = arith.constant 0 : index
    %3 = vector.load %arg3[%c0_3, %c0_4] : memref<64x1xf32, #tpu.memory_space<vmem>>, vector<64x1xf32>
    %4 = vector.broadcast %3 : vector<64x1xf32> to vector<64x128xf32>
    %5 = arith.addf %2, %4 : vector<64x128xf32>
    %cst_5 = arith.constant 0.000000e+00 : f32
    %6 = vector.broadcast %cst_5 : f32 to vector<64x128xf32>
    %7 = arith.maximumf %5, %6 : vector<64x128xf32>
    %c0_6 = arith.constant 0 : index
    %c0_7 = arith.constant 0 : index
    %8 = vector.load %arg4[%c0_6, %c0_7] : memref<32x64xbf16, #tpu.memory_space<vmem>>, vector<32x64xbf16>
    %9 = arith.truncf %7 : vector<64x128xf32> to vector<64x128xbf16>
    %cst_8 = arith.constant dense<0.000000e+00> : vector<32x128xf32>
    %10 = tpu.matmul %8, %9, %cst_8 {dimension_numbers = #tpu.dot_dimension_numbers<[1], [0], [0], [1], [0, 0, 1, 1], [], []>} : vector<32x64xbf16>, vector<64x128xbf16>, vector<32x128xf32> -> vector<32x128xf32>
    %c0_9 = arith.constant 0 : index
    %c0_10 = arith.constant 0 : index
    %11 = vector.load %arg5[%c0_9, %c0_10] : memref<32x1xf32, #tpu.memory_space<vmem>>, vector<32x1xf32>
    %12 = vector.broadcast %11 : vector<32x1xf32> to vector<32x128xf32>
    %13 = arith.addf %10, %12 : vector<32x128xf32>
    %cst_11 = arith.constant 0.000000e+00 : f32
    %14 = vector.broadcast %cst_11 : f32 to vector<32x128xf32>
    %15 = arith.maximumf %13, %14 : vector<32x128xf32>
    %c0_12 = arith.constant 0 : index
    %c0_13 = arith.constant 0 : index
    %16 = vector.load %arg6[%c0_12, %c0_13] : memref<16x32xbf16, #tpu.memory_space<vmem>>, vector<16x32xbf16>
    %17 = arith.truncf %15 : vector<32x128xf32> to vector<32x128xbf16>
    %cst_14 = arith.constant dense<0.000000e+00> : vector<16x128xf32>
    %18 = tpu.matmul %16, %17, %cst_14 {dimension_numbers = #tpu.dot_dimension_numbers<[1], [0], [0], [1], [0, 0, 1, 1], [], []>} : vector<16x32xbf16>, vector<32x128xbf16>, vector<16x128xf32> -> vector<16x128xf32>
    %c0_15 = arith.constant 0 : index
    %c0_16 = arith.constant 0 : index
    %19 = vector.load %arg7[%c0_15, %c0_16] : memref<16x1xf32, #tpu.memory_space<vmem>>, vector<16x1xf32>
    %20 = vector.broadcast %19 : vector<16x1xf32> to vector<16x128xf32>
    %21 = arith.addf %18, %20 : vector<16x128xf32>
    %cst_17 = arith.constant 0.000000e+00 : f32
    %22 = vector.broadcast %cst_17 : f32 to vector<16x128xf32>
    %23 = arith.maximumf %21, %22 : vector<16x128xf32>
    %c0_18 = arith.constant 0 : index
    %c0_19 = arith.constant 0 : index
    %24 = vector.load %arg8[%c0_18, %c0_19] : memref<16x1xf32, #tpu.memory_space<vmem>>, vector<16x1xf32>
    %25 = vector.broadcast %24 : vector<16x1xf32> to vector<16x128xf32>
    %26 = arith.mulf %23, %25 : vector<16x128xf32>
    %cst_20 = arith.constant dense<0.000000e+00> : vector<128xf32>
    %27 = vector.multi_reduction <add>, %26, %cst_20 [0] : vector<16x128xf32> to vector<128xf32>
    %28 = vector.shape_cast %27 : vector<128xf32> to vector<1x128xf32>
    %c0_21 = arith.constant 0 : index
    %c0_22 = arith.constant 0 : index
    %29 = vector.load %arg9[%c0_21, %c0_22] : memref<1x1xf32, #tpu.memory_space<vmem>>, vector<1x1xf32>
    %30 = vector.broadcast %29 : vector<1x1xf32> to vector<1x128xf32>
    %31 = arith.addf %28, %30 : vector<1x128xf32>
    %cst_23 = arith.constant 0.000000e+00 : f32
    %32 = vector.broadcast %cst_23 : f32 to vector<1x128xf32>
    %33 = arith.subf %32, %31 : vector<1x128xf32>
    %34 = math.exp %33 : vector<1x128xf32>
    %cst_24 = arith.constant 1.000000e+00 : f32
    %35 = vector.broadcast %cst_24 : f32 to vector<1x128xf32>
    %36 = arith.addf %35, %34 : vector<1x128xf32>
    %37 = tpu.reciprocal %36 : vector<1x128xf32> -> vector<1x128xf32>
    %c0_25 = arith.constant 0 : index
    %c0_26 = arith.constant 0 : index
    %38 = vector.load %arg10[%c0_25, %c0_26] : memref<1x128xf32, #tpu.memory_space<vmem>>, vector<1x128xf32>
    tpu.vector_store %arg10[%c0_25, %c0_26], %37 {strides = array<i32>} : memref<1x128xf32, #tpu.memory_space<vmem>>, vector<1x128xf32>,
    return
  }
  func.func @transform_0(%arg0: i32) -> (i32, i32) {
    %c0_i32 = arith.constant 0 : i32
    %c0_i32_0 = arith.constant 0 : i32
    return %c0_i32, %arg0 : i32, i32
  }
  func.func @transform_1(%arg0: i32) -> (i32, i32) {
    %c0_i32 = arith.constant 0 : i32
    %c0_i32_0 = arith.constant 0 : i32
    %c0_i32_1 = arith.constant 0 : i32
    return %c0_i32, %c0_i32_0 : i32, i32
  }
  func.func @transform_2(%arg0: i32) -> (i32, i32) {
    %c0_i32 = arith.constant 0 : i32
    %c0_i32_0 = arith.constant 0 : i32
    %c0_i32_1 = arith.constant 0 : i32
    return %c0_i32, %c0_i32_0 : i32, i32
  }
  func.func @transform_3(%arg0: i32) -> (i32, i32) {
    %c0_i32 = arith.constant 0 : i32
    %c0_i32_0 = arith.constant 0 : i32
    %c0_i32_1 = arith.constant 0 : i32
    return %c0_i32, %c0_i32_0 : i32, i32
  }
  func.func @transform_4(%arg0: i32) -> (i32, i32) {
    %c0_i32 = arith.constant 0 : i32
    %c0_i32_0 = arith.constant 0 : i32
    %c0_i32_1 = arith.constant 0 : i32
    return %c0_i32, %c0_i32_0 : i32, i32
  }
  func.func @transform_5(%arg0: i32) -> (i32, i32) {
    %c0_i32 = arith.constant 0 : i32
    %c0_i32_0 = arith.constant 0 : i32
    %c0_i32_1 = arith.constant 0 : i32
    return %c0_i32, %c0_i32_0 : i32, i32
  }
  func.func @transform_6(%arg0: i32) -> (i32, i32) {
    %c0_i32 = arith.constant 0 : i32
    %c0_i32_0 = arith.constant 0 : i32
    %c0_i32_1 = arith.constant 0 : i32
    return %c0_i32, %c0_i32_0 : i32, i32
  }
  func.func @transform_7(%arg0: i32) -> (i32, i32) {
    %c0_i32 = arith.constant 0 : i32
    %c0_i32_0 = arith.constant 0 : i32
    %c0_i32_1 = arith.constant 0 : i32
    return %c0_i32, %c0_i32_0 : i32, i32
  }
  func.func @transform_8(%arg0: i32) -> (i32, i32) {
    %c0_i32 = arith.constant 0 : i32
    %c0_i32_0 = arith.constant 0 : i32
    %c0_i32_1 = arith.constant 0 : i32
    return %c0_i32, %c0_i32_0 : i32, i32
  }
  func.func @transform_9(%arg0: i32) -> (i32, i32) {
    %c0_i32 = arith.constant 0 : i32
    %c0_i32_0 = arith.constant 0 : i32
    return %c0_i32, %arg0 : i32, i32
  }
}

</mosaic_0001>

<bundles_post_ra>
// kernel: fcnn4_forward.1
= control target key start
LH: loop header
LB: loop body
LE: loop exit
PB: predicated region body
PF: predicated region fallthrough
CT: control target
= control target key end

     0   :  { %vm125_vm0 = vcmask 1043456   ;;  %vm112_vm1 = vcmask 64512   ;;  %v489_v1 = vmov 0   ;;  %vm244_vm2 = vcmask 523264   ;;  %s626_s0 = inlined_call_operand.vmem [shape: bf16[8,128], index: 0, kind: input, shape index: {}]   ;;  %s627_s1 = inlined_call_operand.vmem [shape: bf16[64,8], index: 1, kind: input, shape index: {}]   ;;  %s628_s8 = inlined_call_operand.<no memory space> [shape: f32[1,1], index: 8, kind: input, shape index: {}]   ;;  %s629_s2 = inlined_call_operand.vmem [shape: f32[64,1], index: 2, kind: input, shape index: {}]   ;;  %s630_s4 = inlined_call_operand.vmem [shape: f32[32,1], index: 4, kind: input, shape index: {}]   ;;  %s631_s6 = inlined_call_operand.vmem [shape: f32[16,1], index: 6, kind: input, shape index: {}]   ;;  %s632_s7 = inlined_call_operand.vmem [shape: f32[16,1], index: 7, kind: input, shape index: {}]   ;;  %s633_s3 = inlined_call_operand.vmem [shape: bf16[32,64], index: 3, kind: input, shape index: {}]   ;;  %s634_s5 = inlined_call_operand.vmem [shape: bf16[16,32], index: 5, kind: input, shape index: {}]   ;;  %s635_s9 = inlined_call_operand.vmem [shape: f32[1,128], index: 9, kind: output, shape index: {}]  }
   0x1   :  { %v43_v0 = vld [vmem:[%s626_s0] sm:$0xf]  ;;  %476 = vset.pattern.permute.xlu0 %v489_v1  ;;  %477 = vset.pattern.permute.xlu1 %v489_v1  ;;  %v14_v2 = vstv %s628_s8  ;;  %v479_v5 = vld [vmem:[%s627_s1 + $0x8] sm:$0xff]   ;;  %v480_v6 = vld [vmem:[%s627_s1 + $0x10] sm:$0xff]   ;;  %v490_v63 = vmov 0.0   ;;  %vm491_vm3 = vmmov 0  }
   0x2   :  { %472 = vmatprep.subr.msk.bf16.mxu0 %vm125_vm0, %v43_v0  ;;  %v127_v3 = vsel %vm125_vm0, %v43_v0, 0  ;;  %v478_v4 = vld [vmem:[%s627_s1] sm:$0xff]   ;;  %15 = vst [vmem:[#allocation2] sm:$0x1] %v14_v2  ;;  %v50_v7 = vld [vmem:[%s629_s2 + $0x30] sm:$0xff]  ;;  %v51_v9 = vld [vmem:[%s629_s2 + $0x38] sm:$0xff] }
   0x3   :  { %443 = vmatpush3.bf16.msra.mxu0 %v127_v3  ;;  %444 = vmatprep.mubr.msk.bf16.mxu0 %vm112_vm1, %v478_v4  ;;  %v48_v8 = vld [vmem:[%s629_s2 + $0x20] sm:$0xff]  ;;  %v49_v10 = vld [vmem:[%s629_s2 + $0x28] sm:$0xff]  ;;  %v481_v11 = vld [vmem:[%s627_s1 + $0x18] sm:$0xff]   ;;  %vm325_vm4 = vcmask 261120  }
   0x4   :  { %84 = vperm.xlu0 %476, %v50_v7   ;;  %74 = vperm.xlu1 %477, %v48_v8   ;;  %v46_v12 = vld [vmem:[%s629_s2 + $0x10] sm:$0xff]  ;;  %v47_v13 = vld [vmem:[%s629_s2 + $0x18] sm:$0xff]  ;;  %v44_v14 = vld [vmem:[%s629_s2] sm:$0xff] }
   0x5   :  { %v45_v15 = vld [vmem:[%s629_s2 + $0x8] sm:$0xff]  ;;  %v212_v16 = vld [vmem:[%s630_s4 + $0x10] sm:$0xff]  ;;  %v213_v17 = vld [vmem:[%s630_s4 + $0x18] sm:$0xff]  ;;  %464 = vmatprep.subr.bf16.mxu0 %v490_v63 }
   0x6   :  { %445 = vmatmul.mubr.msk.bf16.vlgmr.msra.gmra.mxu0 %vm112_vm1, %v479_v5  ;;  %v210_v18 = vld [vmem:[%s630_s4] sm:$0xff]  ;;  %v211_v19 = vld [vmem:[%s630_s4 + $0x8] sm:$0xff] }
   0x7   :  { %448 = vmatprep.mubr.msk.bf16.mxu0 %vm112_vm1, %v480_v6  ;;  %v308_v20 = vld [vmem:[%s631_s6] sm:$0xff]  ;;  %v309_v21 = vld [vmem:[%s631_s6 + $0x8] sm:$0xff] }
   0x8   :  { %89 = vperm.xlu0 %476, %v51_v9   ;;  %79 = vperm.xlu1 %477, %v49_v10   ;;  %v372_v22 = vld [vmem:[%s632_s7] sm:$0xff]  ;;  %v373_v23 = vld [vmem:[%s632_s7 + $0x8] sm:$0xff] }
   0x9   :  { %v393_v24 = vld [vmem:[#allocation2] sm:$0x1]  ;;  %v483_v62 = vld [vmem:[%s633_s3 + $0x8] sm:$0xff]  }
   0xa   :  { %v482_v25 = vld [vmem:[%s633_s3] sm:$0xff]  }
   0xb   :  { %460 = vmatprep.mubr.msk.bf16.mxu1 %vm244_vm2, %v482_v25 }
   0xc   :  { %64 = vperm.xlu0 %476, %v46_v12   ;;  %69 = vperm.xlu1 %477, %v47_v13  }
   0xe   :  { %449 = vmatmul.mubr.msk.bf16.gmra.mxu0 %vm112_vm1, %v481_v11 }
   0xf   :  { %468 = vmatprep.mubr.msk.bf16.mxu0 %vm491_vm3, %v490_v63 }
  0x10   :  { %54 = vperm.xlu0 %476, %v44_v14   ;;  %59 = vperm.xlu1 %477, %v45_v15  }
  0x14   :  { %226 = vperm.xlu0 %476, %v212_v16   ;;  %231 = vperm.xlu1 %477, %v213_v17  }
  0x18   :  { %216 = vperm.xlu0 %476, %v210_v18   ;;  %221 = vperm.xlu1 %477, %v211_v19   ;;  %v484_v18 = vld [vmem:[%s634_s5] sm:$0xff]  }
  0x1c   :  { %312 = vperm.xlu0 %476, %v308_v20   ;;  %317 = vperm.xlu1 %477, %v309_v21  }
  0x20   :  { %376 = vperm.xlu0 %476, %v372_v22   ;;  %381 = vperm.xlu1 %477, %v373_v23  }
  0x24   :  { %396 = vperm.xlu0 %476, %v393_v24  }
  0x7f   :  { %v75_v26 = vpop.permute.xlu1 %74  ;;  %v85_v28 = vpop.permute.xlu0 %84 }
  0x83   :  { %v80_v31 = vpop.permute.xlu1 %79  ;;  %v90_v33 = vpop.permute.xlu0 %89 }
  0x87   :  { %v70_v37 = vpop.permute.xlu1 %69  ;;  %v65_v41 = vpop.permute.xlu0 %64 }
  0x8b   :  { %v60_v51 = vpop.permute.xlu1 %59  ;;  %v55_v55 = vpop.permute.xlu0 %54 }
  0x8f   :  { %v227_v0 = vpop.permute.xlu0 %226  ;;  %v232_v1 = vpop.permute.xlu1 %231 }
  0x93   :  { %v217_v6 = vpop.permute.xlu0 %216  ;;  %v222_v8 = vpop.permute.xlu1 %221 }
  0x97   :  { %v313_v19 = vpop.permute.xlu0 %312  ;;  %v318_v22 = vpop.permute.xlu1 %317 }
  0xc6   :  { %v446_v27 = vpop.f32.mrf.mxu0 }
  0xc7   :  { %v172_v47 = vadd.f32 %v446_v27, %v65_v41 }
  0xc8   :  { %v163_v29 = vpop.f32.mrf.mxu0 }
  0xc9   :  { %v196_v56 = vmax.f32 %v172_v47, 0.0  ;;  %v164_v57 = vadd.f32 %v163_v29, %v55_v55  ;;  %v377_v29 = vpop.permute.xlu0 %376 }
  0xca   :  { %v447_v30 = vpop.f32.mrf.mxu0 }
  0xcb   :  { %v175_v43 = vadd.f32 %v447_v30, %v70_v37  ;;  %v194_v60 = vmax.f32 %v164_v57, 0.0  ;;  %v382_v30 = vpop.permute.xlu1 %381 }
  0xcc   :  { %v166_v32 = vpop.f32.mrf.mxu0 }
  0xcd   :  { %v197_v52 = vmax.f32 %v175_v43, 0.0  ;;  %v167_v53 = vadd.f32 %v166_v32, %v60_v51  ;;  %v397_v41 = vpop.permute.xlu0 %396 }
  0xce   :  { %v450_v34 = vpop.f32.mrf.mxu0 }
  0xcf   :  { %v188_v36 = vadd.f32 %v450_v34, %v85_v28  ;;  %v207_v58 = vpack.c.bf16 %v197_v52, %v196_v56  ;;  %v195_v59 = vmax.f32 %v167_v53, 0.0 }
  0xd0   :  { %v179_v35 = vpop.f32.mrf.mxu0 }
  0xd1   :  { %v180_v39 = vadd.f32 %v179_v35, %v75_v26  ;;  %v200_v44 = vmax.f32 %v188_v36, 0.0  ;;  %v206_v61 = vpack.c.bf16 %v195_v59, %v194_v60 }
  0xd2   :  { %v451_v38 = vpop.f32.mrf.mxu0 }
  0xd3   :  { %v191_v40 = vadd.f32 %v451_v38, %v90_v33  ;;  %v198_v48 = vmax.f32 %v180_v39, 0.0  ;;  %v399_v33 = vlaneseq }
  0xd4   :  { %v182_v42 = vpop.f32.mrf.mxu0 }
  0xd5   :  { %v201_v45 = vmax.f32 %v191_v40, 0.0  ;;  %v183_v46 = vadd.f32 %v182_v42, %v80_v31  ;;  %v400_v36 = vshrl.u32 %v399_v33, 7 }
  0xd7   :  { %v199_v49 = vmax.f32 %v183_v46, 0.0  ;;  %v209_v50 = vpack.c.bf16 %v201_v45, %v200_v44  ;;  %v401_v39 = vsub.s32 0, %v400_v36 }
  0xd9   :  { %v208_v54 = vpack.c.bf16 %v199_v49, %v198_v48  ;;  %452 = vmatprep.subr.bf16.mxu1 %v209_v50  ;;  %v402_v43 = vrot.slane %v397_v41, %v401_v39 }
  0xda   :  { %453 = vmatpush3.bf16.msra.mxu1 %v209_v50 }
  0xdb   :  { %454 = vmatprep.subr.bf16.mxu1 %v208_v54 }
  0xde   :  { %455 = vmatpush3.bf16.msra.mxu1 %v208_v54 }
  0xdf   :  { %456 = vmatprep.subr.bf16.mxu1 %v207_v58 }
  0xe2   :  { %457 = vmatpush3.bf16.msra.mxu1 %v207_v58 }
  0xe3   :  { %458 = vmatprep.subr.bf16.mxu1 %v206_v61 }
  0xe6   :  { %459 = vmatpush3.bf16.msra.mxu1 %v206_v61 }
  0xe9   :  { %461 = vmatmul.mubr.msk.bf16.vlgmr.msra.gmra.mxu1 %vm244_vm2, %v483_v62 }
 0x1a9   :  { %v462_v2 = vpop.f32.mrf.mxu1 }
 0x1aa   :  { %v294_v4 = vadd.f32 %v462_v2, %v227_v0 }
 0x1ab   :  { %v285_v3 = vpop.f32.mrf.mxu1 }
 0x1ac   :  { %v302_v10 = vmax.f32 %v294_v4, 0.0  ;;  %v286_v11 = vadd.f32 %v285_v3, %v217_v6 }
 0x1ad   :  { %v463_v5 = vpop.f32.mrf.mxu1 }
 0x1ae   :  { %v297_v7 = vadd.f32 %v463_v5, %v232_v1  ;;  %v300_v16 = vmax.f32 %v286_v11, 0.0 }
 0x1af   :  { %v288_v9 = vpop.f32.mrf.mxu1 }
 0x1b0   :  { %v303_v12 = vmax.f32 %v297_v7, 0.0  ;;  %v289_v13 = vadd.f32 %v288_v9, %v222_v8 }
 0x1b2   :  { %v307_v14 = vpack.c.bf16 %v303_v12, %v302_v10  ;;  %v301_v15 = vmax.f32 %v289_v13, 0.0 }
 0x1b4   :  { %465 = vmatpush3.bf16.msra.mxu0 %v307_v14  ;;  %v306_v17 = vpack.c.bf16 %v301_v15, %v300_v16 }
 0x1b5   :  { %466 = vmatprep.subr.bf16.mxu0 %v490_v63 }
 0x1b8   :  { %467 = vmatpush3.bf16.msra.mxu0 %v306_v17 }
 0x1bb   :  { %469 = vmatmul.mubr.msk.bf16.vlgmr.msra.gmra.mxu0 %vm325_vm4, %v484_v18 }
 0x27b   :  { %v363_v20 = vpop.f32.mrf.mxu0 }
 0x27c   :  { %v364_v21 = vadd.f32 %v363_v20, %v313_v19 }
 0x27d   :  { %v470_v23 = vpop.f32.mrf.mxu0 }
 0x27e   :  { %v370_v25 = vmax.f32 %v364_v21, 0.0 }
 0x27f   :  { %v366_v24 = vpop.f32.mrf.mxu0 }
 0x280   :  { %v367_v26 = vadd.f32 %v366_v24, %v318_v22  ;;  %v384_v31 = vmul.f32 %v377_v29, %v370_v25 }
 0x281   :  { %v471_v27 = vpop.f32.mrf.mxu0 }
 0x282   :  { %v371_v28 = vmax.f32 %v367_v26, 0.0 }
 0x284   :  { %v385_v32 = vmul.f32 %v382_v30, %v371_v28 }
 0x286   :  { %v386_v34 = vadd.f32 %v385_v32, %v384_v31 }
 0x288   :  { %v387_v35 = vrot.slane %v386_v34, 4 }
 0x28a   :  { %v388_v37 = vadd.f32 %v387_v35, %v386_v34 }
 0x28c   :  { %v389_v38 = vrot.slane %v388_v37, 2 }
 0x28e   :  { %v390_v40 = vadd.f32 %v389_v38, %v388_v37 }
 0x290   :  { %v391_v42 = vrot.slane %v390_v40, 1 }
 0x292   :  { %v392_v44 = vadd.f32 %v391_v42, %v390_v40 }
 0x294   :  { %v403_v45 = vadd.f32 %v402_v43, %v392_v44 }
 0x296   :  { %v404_v46 = vsub.f32 0.0, %v403_v45 }
 0x298   :  { %v405_v47 = vmul.f32 1.442695, %v404_v46 }
 0x29a   :  { %485 = vpow2.f32 %v405_v47 }
 0x2a7   :  { %v486_v48 = vpop.eup %485 }
 0x2a8   :  { %v407_v49 = vadd.f32 1.0, %v486_v48 }
 0x2aa   :  { %487 = vrcp.f32 %v407_v49 }
 0x2b7   :  { %v488_v50 = vpop.eup %487 }
 0x2b8   :  { %409 = vst [vmem:[%s635_s9] sm:$0x1] %v488_v50 }

</bundles_post_ra>
